<compile_context>
chip_gen: v6e
topology: v6e:2x2x1
jax: 0.10.0
libtpu: 0.0.40
codegen_flags: <defaults>
</compile_context>

<pallas_src>
import jax
import jax.numpy as jnp
from jax.experimental import pallas as pl
from jax.experimental.pallas import tpu as pltpu


# ----------------------------------------------------------------------------
# Pallas kernel: fused identity/copy of both embedding tables
# ----------------------------------------------------------------------------
def _mf_forward_kernel(user_ref, item_ref, user_out_ref, item_out_ref):
    user_out_ref[...] = user_ref[...]
    item_out_ref[...] = item_ref[...]


def mf_forward(adj, user_emb, item_emb):
    """Replicates MF.forward(adj): returns (user_embedding.weight,
    item_embedding.weight). `adj` is accepted only to mirror the PyTorch
    signature; the reference forward never uses it."""
    del adj  # unused by the reference forward

    n_users, d = user_emb.shape
    n_items, d_i = item_emb.shape
    assert d == d_i

    # TODO(synk): for embedding tables larger than VMEM, switch to a row-tiled
    # grid per table; at module scale both tables fit in a single VMEM block.
    return pl.pallas_call(
        _mf_forward_kernel,
        out_shape=(
            jax.ShapeDtypeStruct((n_users, d), user_emb.dtype),
            jax.ShapeDtypeStruct((n_items, d), item_emb.dtype),
        ),
        grid_spec=pltpu.PrefetchScalarGridSpec(
            num_scalar_prefetch=0,
            grid=(1,),
            in_specs=[
                pl.BlockSpec((n_users, d), lambda i: (0, 0)),
                pl.BlockSpec((n_items, d), lambda i: (0, 0)),
            ],
            out_specs=(
                pl.BlockSpec((n_users, d), lambda i: (0, 0)),
                pl.BlockSpec((n_items, d), lambda i: (0, 0)),
            ),
        ),
        compiler_params=pltpu.CompilerParams(
            dimension_semantics=("arbitrary",)),
    )(user_emb, item_emb)


# ----------------------------------------------------------------------------
# Deterministic parameter init (xavier_uniform, same semantics as PyTorch)
# ----------------------------------------------------------------------------
def xavier_uniform(key, shape, dtype=jnp.float32):
    fan_in, fan_out = shape[0], shape[1]
    bound = (6.0 / (fan_in + fan_out)) ** 0.5
    return jax.random.uniform(key, shape, dtype=dtype, minval=-bound, maxval=bound)


if __name__ == "__main__":
    # Small shapes consistent with the module constructor.
    n_users = 96
    n_items = 160
    embedding_dim = 128
    weight_size = [64, 64]       # unused by MF.forward; kept to mirror the ctor
    dropout_list = [0.1, 0.1]    # unused by MF.forward; kept to mirror the ctor
    N = n_users + n_items        # 256

    key = jax.random.PRNGKey(0)
    k_u, k_i, k_adj = jax.random.split(key, 3)

    user_emb = xavier_uniform(k_u, (n_users, embedding_dim))
    item_emb = xavier_uniform(k_i, (n_items, embedding_dim))

    # adj is part of forward()'s signature but unused by it; build a small
    # deterministic placeholder anyway.
    adj_raw = jax.random.uniform(k_adj, (N, N), dtype=jnp.float32)
    adj_mask = (adj_raw > 0.8).astype(jnp.float32)
    adj = adj_mask / jnp.maximum(adj_mask.sum(axis=1, keepdims=True), 1.0)

    fwd = jax.jit(mf_forward)
    u_g, i_g = fwd(adj, user_emb, item_emb)
    jax.block_until_ready((u_g, i_g))

    # Reference check: MF.forward returns the embedding weights unchanged.
    assert u_g.shape == (n_users, embedding_dim)
    assert i_g.shape == (n_items, embedding_dim)
    assert jnp.array_equal(u_g, user_emb)
    assert jnp.array_equal(i_g, item_emb)

    print("KERNEL_OK")
</pallas_src>

<mosaic_0001>
module attributes {stable_mosaic.version = 11 : i64} {
  func.func @_mf_forward_kernel(%arg0: i32, %arg1: memref<96x128xf32, #tpu.memory_space<vmem>>, %arg2: memref<160x128xf32, #tpu.memory_space<vmem>>, %arg3: memref<96x128xf32, #tpu.memory_space<vmem>>, %arg4: memref<160x128xf32, #tpu.memory_space<vmem>>) attributes {dimension_semantics = [#tpu.dimension_semantics<arbitrary>], iteration_bounds = array<i64: 1>, scalar_prefetch = 0 : i64, scratch_operands = 0 : i64, tpu.core_type = #tpu.core_type<tc>, window_params = [{pipeline_mode = #tpu.pipeline_mode<synchronous>, transform_indices = @transform_0, window_bounds = array<i64: 96, 128>}, {pipeline_mode = #tpu.pipeline_mode<synchronous>, transform_indices = @transform_1, window_bounds = array<i64: 160, 128>}, {pipeline_mode = #tpu.pipeline_mode<synchronous>, transform_indices = @transform_2, window_bounds = array<i64: 96, 128>}, {pipeline_mode = #tpu.pipeline_mode<synchronous>, transform_indices = @transform_3, window_bounds = array<i64: 160, 128>}]} {
    %c0 = arith.constant 0 : index
    %c0_0 = arith.constant 0 : index
    %0 = vector.load %arg1[%c0, %c0_0] : memref<96x128xf32, #tpu.memory_space<vmem>>, vector<96x128xf32>
    %c0_1 = arith.constant 0 : index
    %c0_2 = arith.constant 0 : index
    %1 = vector.load %arg3[%c0_1, %c0_2] : memref<96x128xf32, #tpu.memory_space<vmem>>, vector<96x128xf32>
    tpu.vector_store %arg3[%c0_1, %c0_2], %0 {strides = array<i32>} : memref<96x128xf32, #tpu.memory_space<vmem>>, vector<96x128xf32>,
    %c0_3 = arith.constant 0 : index
    %c0_4 = arith.constant 0 : index
    %2 = vector.load %arg2[%c0_3, %c0_4] : memref<160x128xf32, #tpu.memory_space<vmem>>, vector<160x128xf32>
    %c0_5 = arith.constant 0 : index
    %c0_6 = arith.constant 0 : index
    %3 = vector.load %arg4[%c0_5, %c0_6] : memref<160x128xf32, #tpu.memory_space<vmem>>, vector<160x128xf32>
    tpu.vector_store %arg4[%c0_5, %c0_6], %2 {strides = array<i32>} : memref<160x128xf32, #tpu.memory_space<vmem>>, vector<160x128xf32>,
    return
  }
  func.func @transform_0(%arg0: i32) -> (i32, i32) {
    %c0_i32 = arith.constant 0 : i32
    %c0_i32_0 = arith.constant 0 : i32
    %c0_i32_1 = arith.constant 0 : i32
    return %c0_i32, %c0_i32_0 : i32, i32
  }
  func.func @transform_1(%arg0: i32) -> (i32, i32) {
    %c0_i32 = arith.constant 0 : i32
    %c0_i32_0 = arith.constant 0 : i32
    %c0_i32_1 = arith.constant 0 : i32
    return %c0_i32, %c0_i32_0 : i32, i32
  }
  func.func @transform_2(%arg0: i32) -> (i32, i32) {
    %c0_i32 = arith.constant 0 : i32
    %c0_i32_0 = arith.constant 0 : i32
    %c0_i32_1 = arith.constant 0 : i32
    return %c0_i32, %c0_i32_0 : i32, i32
  }
  func.func @transform_3(%arg0: i32) -> (i32, i32) {
    %c0_i32 = arith.constant 0 : i32
    %c0_i32_0 = arith.constant 0 : i32
    %c0_i32_1 = arith.constant 0 : i32
    return %c0_i32, %c0_i32_0 : i32, i32
  }
}

</mosaic_0001>

<bundles_post_ra>
// kernel: mf_forward.1
= control target key start
LH: loop header
LB: loop body
LE: loop exit
PB: predicated region body
PF: predicated region fallthrough
CT: control target
= control target key end

     0   :  { %9 = vsyncpa [#allocation3], 0  ;;  %s292_s0 = inlined_call_operand.hbm [shape: f32[96,128], index: 0, kind: input, shape index: {}]   ;;  %s293_s1 = inlined_call_operand.hbm [shape: f32[160,128], index: 1, kind: input, shape index: {}]   ;;  %s294_s2 = inlined_call_operand.hbm [shape: f32[96,128], index: 2, kind: output, shape index: {0}]   ;;  %s295_s3 = inlined_call_operand.hbm [shape: f32[160,128], index: 3, kind: output, shape index: {1}]  }
   0x1   :  { %10 = vsyncpa [#allocation6], 0 }
   0x2   :  { %11 = vsyncpa [#allocation4], 0 }
   0x3   :  { %12 = vsyncpa [#allocation9], 0  ;;  %s235_s12 = smov [#allocation2]  }
   0x4   :  { %s18_s13 = sshll.u32 %s235_s12, 4  ;;  %s19_s13 = int_to_ptr.vmem [resolvable:$true] %s18_s13 }
   0x5   :  { %s155_s14 = scalar_lea.vmem %s19_s13, 1536  ;;  %p160_p1 = scmp.lt.s32.totalorder %s19_s13, %s19_s13 }
   0x6   :  { %p156_p0 = scmp.ne.s32.totalorder %s19_s13, %s155_s14  ;;  %p161_p2 = scmp.lt.s32.totalorder %s155_s14, %s155_s14 }
   0x8   :  { %p162_p3 = por %p161_p2, %p160_p1 }
   0xa   :  { %p163_p4 = pnand %p162_p3, %p156_p0 }
   0xc   :  { %166 = shalt.err (!%p163_p4)
}
   0xd   :  { %s236_s15 = smov 128   ;;  %s237_s16 = smov 8  }
   0xe   :  { %24 = dma.hbm_to_vmem [thread:$0]  %s292_s0, 1536, %s19_s13, [#allocation3], %s236_s15, %s236_s15, %s237_s16  }
   0xf   :  { %s238_s19 = smov [#allocation5]  }
  0x10   :  { %s30_s20 = sshll.u32 %s238_s19, 4  ;;  %s31_s20 = int_to_ptr.vmem [resolvable:$true] %s30_s20 }
  0x11   :  { %s175_s21 = scalar_lea.vmem %s31_s20, 2560  ;;  %p180_p6 = scmp.lt.s32.totalorder %s31_s20, %s31_s20 }
  0x12   :  { %p176_p5 = scmp.ne.s32.totalorder %s31_s20, %s175_s21  ;;  %p181_p7 = scmp.lt.s32.totalorder %s175_s21, %s175_s21 }
  0x14   :  { %p182_p8 = por %p181_p7, %p180_p6 }
  0x16   :  { %p183_p9 = pnand %p182_p8, %p176_p5 }
  0x18   :  { %186 = shalt.err (!%p183_p9)
}
  0x19   :  { %36 = dma.hbm_to_vmem [thread:$0]  %s293_s1, 2560, %s31_s20, [#allocation6], %s236_s15, %s236_s15, %s237_s16  }
  0x1a   :  { %227 = dma.done.wait [#allocation3], 1536  }
  0x1b   :  { %228 = vsyncadd [#allocation3], 4294965760 }
  0x1c   :  { %229 = dma.done.wait [#allocation6], 2560  }
  0x1d   :  { %230 = vsyncadd [#allocation6], 4294964736  ;;  %s239_s0 = smov [#allocation7]   ;;  %v43_v0 = vld [vmem:[#allocation2] sm:$0xff]  ;;  %v44_v1 = vld [vmem:[#allocation2 + $0x8] sm:$0xff] }
  0x1e   :  { %s112_s24 = sshll.u32 %s239_s0, 4  ;;  %v45_v2 = vld [vmem:[#allocation2 + $0x10] sm:$0xff]  ;;  %55 = vst [vmem:[#allocation7] sm:$0xff] %v43_v0  ;;  %56 = vst [vmem:[#allocation7 + $0x8] sm:$0xff] %v44_v1  ;;  %v46_v3 = vld [vmem:[#allocation2 + $0x18] sm:$0xff]  ;;  %s273_s24 = int_to_ptr.vmem [resolvable:$true] %s112_s24 }
  0x1f   :  { %57 = vst [vmem:[#allocation7 + $0x10] sm:$0xff] %v45_v2  ;;  %v47_v4 = vld [vmem:[#allocation2 + $0x20] sm:$0xff]  ;;  %v48_v5 = vld [vmem:[#allocation2 + $0x28] sm:$0xff]  ;;  %58 = vst [vmem:[#allocation7 + $0x18] sm:$0xff] %v46_v3  ;;  %s187_s1 = scalar_lea.vmem %s273_s24, 1536  ;;  %p192_p11 = scmp.lt.s32.totalorder %s273_s24, %s273_s24 }
  0x20   :  { %59 = vst [vmem:[#allocation7 + $0x20] sm:$0xff] %v47_v4  ;;  %60 = vst [vmem:[#allocation7 + $0x28] sm:$0xff] %v48_v5  ;;  %v49_v6 = vld [vmem:[#allocation2 + $0x30] sm:$0xff]  ;;  %v50_v7 = vld [vmem:[#allocation2 + $0x38] sm:$0xff]  ;;  %p188_p10 = scmp.ne.s32.totalorder %s273_s24, %s187_s1  ;;  %p193_p12 = scmp.lt.s32.totalorder %s187_s1, %s187_s1 }
  0x21   :  { %v51_v8 = vld [vmem:[#allocation2 + $0x40] sm:$0xff]  ;;  %61 = vst [vmem:[#allocation7 + $0x30] sm:$0xff] %v49_v6  ;;  %62 = vst [vmem:[#allocation7 + $0x38] sm:$0xff] %v50_v7  ;;  %v52_v9 = vld [vmem:[#allocation2 + $0x48] sm:$0xff] }
  0x22   :  { %63 = vst [vmem:[#allocation7 + $0x40] sm:$0xff] %v51_v8  ;;  %v53_v10 = vld [vmem:[#allocation2 + $0x50] sm:$0xff]  ;;  %v54_v11 = vld [vmem:[#allocation2 + $0x58] sm:$0xff]  ;;  %64 = vst [vmem:[#allocation7 + $0x48] sm:$0xff] %v52_v9  ;;  %p194_p13 = por %p193_p12, %p192_p11 }
  0x23   :  { %65 = vst [vmem:[#allocation7 + $0x50] sm:$0xff] %v53_v10  ;;  %66 = vst [vmem:[#allocation7 + $0x58] sm:$0xff] %v54_v11  ;;  %v67_v12 = vld [vmem:[#allocation5] sm:$0xff]  ;;  %v68_v13 = vld [vmem:[#allocation5 + $0x8] sm:$0xff] }
  0x24   :  { %v69_v14 = vld [vmem:[#allocation5 + $0x10] sm:$0xff]  ;;  %87 = vst [vmem:[#allocation8] sm:$0xff] %v67_v12  ;;  %88 = vst [vmem:[#allocation8 + $0x8] sm:$0xff] %v68_v13  ;;  %v70_v15 = vld [vmem:[#allocation5 + $0x18] sm:$0xff]  ;;  %p195_p0 = pnand %p194_p13, %p188_p10 }
  0x25   :  { %89 = vst [vmem:[#allocation8 + $0x10] sm:$0xff] %v69_v14  ;;  %v71_v16 = vld [vmem:[#allocation5 + $0x20] sm:$0xff]  ;;  %v72_v17 = vld [vmem:[#allocation5 + $0x28] sm:$0xff] }
  0x26   :  { %198 = shalt.err (!%p195_p0)
}
  0x27   :  { %118 = dma.vmem_to_hbm [thread:$0]  %s273_s24, 1536, %s294_s2, [#allocation4], %s236_s15, %s236_s15, %s237_s16   ;;  %90 = vst [vmem:[#allocation8 + $0x18] sm:$0xff] %v70_v15  ;;  %91 = vst [vmem:[#allocation8 + $0x20] sm:$0xff] %v71_v16  ;;  %v73_v18 = vld [vmem:[#allocation5 + $0x30] sm:$0xff]  ;;  %v74_v19 = vld [vmem:[#allocation5 + $0x38] sm:$0xff] }
  0x28   :  { %92 = vst [vmem:[#allocation8 + $0x28] sm:$0xff] %v72_v17  ;;  %v75_v20 = vld [vmem:[#allocation5 + $0x40] sm:$0xff]  ;;  %s240_s27 = smov [#allocation8]   ;;  %93 = vst [vmem:[#allocation8 + $0x30] sm:$0xff] %v73_v18  ;;  %v76_v21 = vld [vmem:[#allocation5 + $0x48] sm:$0xff] }
  0x29   :  { %s124_s28 = sshll.u32 %s240_s27, 4  ;;  %94 = vst [vmem:[#allocation8 + $0x38] sm:$0xff] %v74_v19  ;;  %95 = vst [vmem:[#allocation8 + $0x40] sm:$0xff] %v75_v20  ;;  %v77_v22 = vld [vmem:[#allocation5 + $0x50] sm:$0xff]  ;;  %v78_v23 = vld [vmem:[#allocation5 + $0x58] sm:$0xff]  ;;  %s125_s28 = int_to_ptr.vmem [resolvable:$true] %s124_s28 }
  0x2a   :  { %96 = vst [vmem:[#allocation8 + $0x48] sm:$0xff] %v76_v21  ;;  %97 = vst [vmem:[#allocation8 + $0x50] sm:$0xff] %v77_v22  ;;  %v79_v24 = vld [vmem:[#allocation5 + $0x60] sm:$0xff]  ;;  %v80_v25 = vld [vmem:[#allocation5 + $0x68] sm:$0xff]  ;;  %s207_s2 = scalar_lea.vmem %s125_s28, 2560  ;;  %p212_p2 = scmp.lt.s32.totalorder %s125_s28, %s125_s28 }
  0x2b   :  { %98 = vst [vmem:[#allocation8 + $0x58] sm:$0xff] %v78_v23  ;;  %v81_v26 = vld [vmem:[#allocation5 + $0x70] sm:$0xff]  ;;  %99 = vst [vmem:[#allocation8 + $0x60] sm:$0xff] %v79_v24  ;;  %v82_v27 = vld [vmem:[#allocation5 + $0x78] sm:$0xff]  ;;  %p208_p1 = scmp.ne.s32.totalorder %s125_s28, %s207_s2  ;;  %p213_p3 = scmp.lt.s32.totalorder %s207_s2, %s207_s2 }
  0x2c   :  { %100 = vst [vmem:[#allocation8 + $0x68] sm:$0xff] %v80_v25  ;;  %101 = vst [vmem:[#allocation8 + $0x70] sm:$0xff] %v81_v26  ;;  %v83_v28 = vld [vmem:[#allocation5 + $0x80] sm:$0xff]  ;;  %v84_v29 = vld [vmem:[#allocation5 + $0x88] sm:$0xff] }
  0x2d   :  { %102 = vst [vmem:[#allocation8 + $0x78] sm:$0xff] %v82_v27  ;;  %103 = vst [vmem:[#allocation8 + $0x80] sm:$0xff] %v83_v28  ;;  %v85_v30 = vld [vmem:[#allocation5 + $0x90] sm:$0xff]  ;;  %v86_v31 = vld [vmem:[#allocation5 + $0x98] sm:$0xff]  ;;  %p214_p4 = por %p213_p3, %p212_p2 }
  0x2e   :  { %104 = vst [vmem:[#allocation8 + $0x88] sm:$0xff] %v84_v29  ;;  %105 = vst [vmem:[#allocation8 + $0x90] sm:$0xff] %v85_v30 }
  0x2f   :  { %106 = vst [vmem:[#allocation8 + $0x98] sm:$0xff] %v86_v31  ;;  %p215_p5 = pnand %p214_p4, %p208_p1 }
  0x31   :  { %218 = shalt.err (!%p215_p5)
}
  0x32   :  { %130 = dma.vmem_to_hbm [thread:$0]  %s125_s28, 2560, %s295_s3, [#allocation9], %s236_s15, %s236_s15, %s237_s16  }
  0x33   :  { %231 = dma.done.wait [#allocation4], 1536  }
  0x34   :  { %232 = vsyncadd [#allocation4], 4294965760 }
  0x35   :  { %233 = dma.done.wait [#allocation9], 2560  }
  0x36   :  { %234 = vsyncadd [#allocation9], 4294964736 }
  0x37   :  { %137 = vsyncpa [#allocation3], 1 }
  0x38   :  { %138 = vsyncpa [#allocation6], 1 }
  0x39   :  { %139 = vsyncpa [#allocation4], 1 }
  0x3a   :  { %140 = vsyncpa [#allocation9], 1 }

</bundles_post_ra>
